<compile_context>
chip_gen: v7x
topology: tpu7x:2x2x1
jax: 0.10.0
libtpu: 0.0.40
codegen_flags: <defaults>
</compile_context>

<pallas_src>
import functools

import numpy as np
import jax
import jax.numpy as jnp
from jax.experimental import pallas as pl
from jax.experimental.pallas import tpu as pltpu


# ----------------------------- Pallas kernel --------------------------------

def _ffb_kernel(x0_ref, x1_ref, wf_ref, bf_ref, mh_ref, uwo_ref, bo_ref,
                out_ref, *, img_h):
    """Fused FeatureFusionBlock forward for one batch block.

    x0_ref, x1_ref : (M, W*C)       M = batch_block * img_h rows (batch-major)
    wf_ref         : (4, 3*W*C, W*C) folded 3x3 conv weights (rcu1/rcu2 convs)
    bf_ref         : (4, 1, W*C)     conv biases tiled over W
    mh_ref         : (2*M, M)        kron(I_bb, Mh) row-upsample matrix
    uwo_ref        : (W*C, 2*W*O)    kron(Mw^T, Wout): W-upsample + 1x1 fused
    bo_ref         : (1, 2*W*O)      out_conv bias tiled over 2*W
    out_ref        : (2*M, 2*W*O)
    """
    M = x0_ref.shape[0]

    # Per-image row index (the block stacks batch_block images along rows).
    row = jax.lax.broadcasted_iota(jnp.int32, (M, 1), 0)
    local_h = row % img_h
    has_above = local_h != 0            # row h-1 exists inside this image
    has_below = local_h != img_h - 1    # row h+1 exists inside this image

    def conv3x3(x, idx):
        # Gather the dy = -1 / 0 / +1 row neighborhoods on the XLU (circular
        # roll + zero mask at per-image boundaries -> padding=1 semantics),
        # then a single fused GEMM with K = 3*W*C.  Bias added once at the end.
        x_above = jnp.where(has_above, pltpu.roll(x, 1, 0), 0.0)      # x[h-1]
        x_below = jnp.where(has_below, pltpu.roll(x, M - 1, 0), 0.0)  # x[h+1]
        x3 = jnp.concatenate([x_above, x, x_below], axis=1)           # (M, 3WC)
        return jnp.dot(x3, wf_ref[idx],
                       preferred_element_type=jnp.float32) + bf_ref[idx]

    def rcu(x, i0):
        # ResidualConvUnit_custom (bn=False, groups=1, activation=ReLU)
        t = jnp.maximum(x, 0.0)
        t = conv3x3(t, i0)
        t = jnp.maximum(t, 0.0)
        t = conv3x3(t, i0 + 1)
        return t + x

    s = x0_ref[...] + rcu(x1_ref[...], 0)   # skip_add(xs[0], resConfUnit1(xs[1]))
    y = rcu(s, 2)                           # resConfUnit2(output)

    # 2x bilinear upsample (align_corners=True) + 1x1 out_conv:
    #   out = kron(I_bb, Mh) @ (y @ kron(Mw^T, Wout)) + bias
    up = jnp.dot(y, uwo_ref[...], preferred_element_type=jnp.float32)  # (M, 2WO)
    o = jnp.dot(mh_ref[...], up, preferred_element_type=jnp.float32)   # (2M, 2WO)
    out_ref[...] = o + bo_ref[...]


# ------------------------- host-side constant folding ------------------------

def _bilinear_matrix(n_in, n_out):
    """1D bilinear interpolation matrix, align_corners=True (PyTorch)."""
    mat = np.zeros((n_out, n_in), np.float32)
    if n_out == 1:
        src = np.zeros((1,), np.float64)
    else:
        src = np.arange(n_out, dtype=np.float64) * (n_in - 1) / (n_out - 1)
    i0 = np.clip(np.floor(src).astype(np.int64), 0, n_in - 1)
    i1 = np.minimum(i0 + 1, n_in - 1)
    frac = (src - i0).astype(np.float32)
    rows = np.arange(n_out)
    np.add.at(mat, (rows, i0), 1.0 - frac)
    np.add.at(mat, (rows, i1), frac)
    return mat


def _fold_conv3x3(w, W):
    """Fold a (O, C, 3, 3) conv weight into a single (3*W*C, W*O) matrix.

    Row index = dy*(W*C) + w_in*C + c matches the in-kernel lane layout of
    X3 = [x[h-1] | x[h] | x[h+1]]; the dx shifts and the zero padding along W
    are baked in (out-of-range w_in entries stay zero).
    """
    w = np.asarray(w, np.float32)
    O, C = w.shape[0], w.shape[1]
    wt = np.transpose(w, (2, 3, 1, 0))               # (dy, dx, c, o)
    mat = np.zeros((3, W, C, W, O), np.float32)      # (dy, w_in, c, w_out, o)
    w_out = np.arange(W)
    for dx in range(3):
        w_in = w_out + dx - 1
        valid = (w_in >= 0) & (w_in < W)
        mat[:, w_in[valid], :, w_out[valid], :] = wt[:, dx][None]
    return mat.reshape(3 * W * C, W * O)


def prepare_ffb_constants(params, H, W, batch_block):
    """Fold all FeatureFusionBlock parameters once per (params, shape).

    Pure (vectorized) numpy; callers should cache/reuse the result so the
    jitted apply function below only uploads these constants once.
    """
    wf = np.stack([_fold_conv3x3(params[k], W)
                   for k in ('rcu1_w1', 'rcu1_w2', 'rcu2_w1', 'rcu2_w2')])
    bf = np.stack([np.tile(np.asarray(params[k], np.float32), W)[None, :]
                   for k in ('rcu1_b1', 'rcu1_b2', 'rcu2_b1', 'rcu2_b2')])

    Mh = _bilinear_matrix(H, 2 * H)                                  # (2H, H)
    Mw = _bilinear_matrix(W, 2 * W)                                  # (2W, W)
    mh_blk = np.kron(np.eye(batch_block, dtype=np.float32), Mh)      # (2M, M)

    wo2d = np.asarray(params['wo'], np.float32)[:, :, 0, 0].T        # (C, O)
    # W-direction upsample and the 1x1 out_conv are both right-multiplies ->
    # fold them exactly:  kron(Mw^T, I_C) @ kron(I_2W, Wout) = kron(Mw^T, Wout)
    uwo = np.kron(Mw.T, wo2d)                                        # (WC, 2WO)
    bo = np.tile(np.asarray(params['bo'], np.float32), 2 * W)[None, :]

    return {'wf': jnp.asarray(wf), 'bf': jnp.asarray(bf),
            'mh': jnp.asarray(mh_blk), 'uwo': jnp.asarray(uwo),
            'bo': jnp.asarray(bo)}


# ------------------------------- apply wrapper --------------------------------

@functools.partial(jax.jit, static_argnames=('img_h', 'img_w', 'c_in', 'c_out',
                                              'batch_block'))
def _ffb_apply(x0, x1, consts, *, img_h, img_w, c_in, c_out, batch_block):
    B = x0.shape[0]
    H, W, C, O = img_h, img_w, c_in, c_out
    WC, WO = W * C, W * O
    M = batch_block * H                 # GEMM M rows per grid step
    nblk = B // batch_block

    def to_slab(x):                     # NCHW -> (B*H, W*C), channels minor
        return jnp.transpose(x, (0, 2, 3, 1)).reshape(B * H, WC)

    x0s, x1s = to_slab(x0), to_slab(x1)

    kernel = functools.partial(_ffb_kernel, img_h=H)
    const3 = lambda g: (0, 0, 0)
    const2 = lambda g: (0, 0)

    out2d = pl.pallas_call(
        kernel,
        out_shape=jax.ShapeDtypeStruct((B * 2 * H, 2 * WO), jnp.float32),
        grid=(nblk,),
        in_specs=[
            pl.BlockSpec((M, WC), lambda g: (g, 0)),       # x0 slab block
            pl.BlockSpec((M, WC), lambda g: (g, 0)),       # x1 slab block
            # Constant operands: index maps are grid-invariant so Pallas only
            # fetches them once.  (With the tiny grid here default buffering
            # is fine; revisit with pipeline_mode buffering only if VMEM ever
            # becomes the limit.)
            pl.BlockSpec((4, 3 * WC, WC), const3),         # fused folded 3x3 weights
            pl.BlockSpec((4, 1, WC), const3),              # conv biases
            pl.BlockSpec((2 * M, M), const2),              # kron(I_bb, Mh)
            pl.BlockSpec((WC, 2 * WO), const2),            # kron(Mw^T, Wout)
            pl.BlockSpec((1, 2 * WO), const2),             # out_conv bias
        ],
        out_specs=pl.BlockSpec((2 * M, 2 * WO), lambda g: (g, 0)),
        compiler_params=pltpu.CompilerParams(
            dimension_semantics=("parallel",)),            # batch blocks independent
    )(x0s, x1s, consts['wf'], consts['bf'], consts['mh'],
      consts['uwo'], consts['bo'])

    # (B*2H, 2*W*O) -> NCHW
    return jnp.transpose(out2d.reshape(B, 2 * H, 2 * W, O), (0, 3, 1, 2))


def _default_batch_block(B, H):
    """Largest divisor of B whose row count (bb*H) still fits in 128 sublanes."""
    bb = 1
    for cand in range(1, B + 1):
        if B % cand == 0 and cand * H <= 128:
            bb = cand
    return bb


def feature_fusion_block(x0_nchw, x1_nchw, params, batch_block=None):
    """FeatureFusionBlock_custom(features, ReLU, deconv=False, bn=False,
    expand=False, align_corners=True) forward, two inputs, NCHW in/out."""
    B, C, H, W = x0_nchw.shape
    O = params['wo'].shape[0]
    if batch_block is None:
        batch_block = _default_batch_block(B, H)
    consts = prepare_ffb_constants(params, H, W, batch_block)
    return _ffb_apply(x0_nchw, x1_nchw, consts, img_h=H, img_w=W,
                      c_in=C, c_out=O, batch_block=batch_block)


# ------------------------- pure-JAX reference (check) ------------------------

def reference(x0, x1, p):
    B, C, H, W = x0.shape
    Mh = jnp.asarray(_bilinear_matrix(H, 2 * H))
    Mw = jnp.asarray(_bilinear_matrix(W, 2 * W))

    def conv3(x, w, b):
        y = jax.lax.conv_general_dilated(
            x, w, window_strides=(1, 1), padding=((1, 1), (1, 1)),
            dimension_numbers=('NCHW', 'OIHW', 'NCHW'))
        return y + b[None, :, None, None]

    def rcu(x, w1, b1, w2, b2):
        t = jnp.maximum(x, 0.0)
        t = conv3(t, w1, b1)
        t = jnp.maximum(t, 0.0)
        t = conv3(t, w2, b2)
        return t + x

    out = x0 + rcu(x1, p['rcu1_w1'], p['rcu1_b1'], p['rcu1_w2'], p['rcu1_b2'])
    out = rcu(out, p['rcu2_w1'], p['rcu2_b1'], p['rcu2_w2'], p['rcu2_b2'])
    out = jnp.einsum('uh,bchw,vw->bcuv', Mh, out, Mw)          # bilinear 2x
    out = jnp.einsum('bchw,oc->bohw', out, p['wo'][:, :, 0, 0]) \
        + p['bo'][None, :, None, None]                          # 1x1 conv
    return out


# ----------------------------------- main ------------------------------------

if __name__ == "__main__":
    B, C, H, W = 2, 4, 16, 16     # features = 4, expand=False -> out_features = 4
    key = jax.random.PRNGKey(0)
    ks = jax.random.split(key, 12)

    def nrm(k, shape, s=0.2):
        return s * jax.random.normal(k, shape, jnp.float32)

    params = {
        'rcu1_w1': nrm(ks[0], (C, C, 3, 3)), 'rcu1_b1': nrm(ks[1], (C,)),
        'rcu1_w2': nrm(ks[2], (C, C, 3, 3)), 'rcu1_b2': nrm(ks[3], (C,)),
        'rcu2_w1': nrm(ks[4], (C, C, 3, 3)), 'rcu2_b1': nrm(ks[5], (C,)),
        'rcu2_w2': nrm(ks[6], (C, C, 3, 3)), 'rcu2_b2': nrm(ks[7], (C,)),
        'wo':      nrm(ks[8], (C, C, 1, 1)), 'bo':      nrm(ks[9], (C,)),
    }
    x0 = jax.random.normal(ks[10], (B, C, H, W), jnp.float32)   # xs[0]
    x1 = jax.random.normal(ks[11], (B, C, H, W), jnp.float32)   # xs[1]

    out = feature_fusion_block(x0, x1, params)
    out = jax.block_until_ready(out)
    assert out.shape == (B, C, 2 * H, 2 * W)

    ref = reference(x0, x1, params)
    np.testing.assert_allclose(np.asarray(out), np.asarray(ref),
                               rtol=1e-3, atol=1e-3)
    print("KERNEL_OK")
</pallas_src>

<mosaic_0001>
module attributes {stable_mosaic.version = 11 : i64} {
  func.func @_ffb_kernel(%arg0: i32, %arg1: memref<32x64xf32, #tpu.memory_space<vmem>>, %arg2: memref<32x64xf32, #tpu.memory_space<vmem>>, %arg3: memref<4x192x64xf32, #tpu.memory_space<vmem>>, %arg4: memref<4x1x64xf32, #tpu.memory_space<vmem>>, %arg5: memref<64x32xf32, #tpu.memory_space<vmem>>, %arg6: memref<64x128xf32, #tpu.memory_space<vmem>>, %arg7: memref<1x128xf32, #tpu.memory_space<vmem>>, %arg8: memref<64x128xf32, #tpu.memory_space<vmem>>) attributes {dimension_semantics = [#tpu.dimension_semantics<parallel>], iteration_bounds = array<i64: 1>, scalar_prefetch = 0 : i64, scratch_operands = 0 : i64, tpu.core_type = #tpu.core_type<tc>, window_params = [{transform_indices = @transform_0, window_bounds = array<i64: 32, 64>}, {transform_indices = @transform_1, window_bounds = array<i64: 32, 64>}, {pipeline_mode = #tpu.pipeline_mode<synchronous>, transform_indices = @transform_2, window_bounds = array<i64: 4, 192, 64>}, {pipeline_mode = #tpu.pipeline_mode<synchronous>, transform_indices = @transform_3, window_bounds = array<i64: 4, 1, 64>}, {pipeline_mode = #tpu.pipeline_mode<synchronous>, transform_indices = @transform_4, window_bounds = array<i64: 64, 32>}, {pipeline_mode = #tpu.pipeline_mode<synchronous>, transform_indices = @transform_5, window_bounds = array<i64: 64, 128>}, {pipeline_mode = #tpu.pipeline_mode<synchronous>, transform_indices = @transform_6, window_bounds = array<i64: 1, 128>}, {transform_indices = @transform_7, window_bounds = array<i64: 64, 128>}]} {
    %0 = tpu.iota {dimensions = array<i32: 0>} : vector<32x1xi32>
    %c16_i32 = arith.constant 16 : i32
    %c0_i32 = arith.constant 0 : i32
    %1 = arith.cmpi eq, %c16_i32, %c0_i32 : i32
    %c1_i32 = arith.constant 1 : i32
    %2 = arith.select %1, %c1_i32, %c16_i32 : i32
    %3 = vector.broadcast %2 : i32 to vector<32x1xi32>
    %4 = arith.remsi %0, %3 : vector<32x1xi32>
    %c0_i32_0 = arith.constant 0 : i32
    %5 = vector.broadcast %c0_i32_0 : i32 to vector<32x1xi32>
    %6 = arith.cmpi ne, %4, %5 : vector<32x1xi32>
    %c0_i32_1 = arith.constant 0 : i32
    %7 = vector.broadcast %c0_i32_1 : i32 to vector<32x1xi32>
    %8 = arith.cmpi slt, %4, %7 : vector<32x1xi32>
    %c0_i32_2 = arith.constant 0 : i32
    %9 = arith.cmpi slt, %2, %c0_i32_2 : i32
    %10 = vector.broadcast %9 : i1 to vector<32x1xi1>
    %11 = vector.broadcast %10 : vector<32x1xi1> to vector<32x1xi1>
    %12 = arith.xori %8, %11 : vector<32x1xi1>
    %13 = arith.andi %12, %6 : vector<32x1xi1>
    %14 = vector.broadcast %2 : i32 to vector<32x1xi32>
    %15 = arith.addi %4, %14 : vector<32x1xi32>
    %16 = arith.select %13, %15, %4 : vector<32x1xi1>, vector<32x1xi32>
    %c0_i32_3 = arith.constant 0 : i32
    %17 = vector.broadcast %c0_i32_3 : i32 to vector<32x1xi32>
    %18 = arith.cmpi ne, %16, %17 : vector<32x1xi32>
    %c15_i32 = arith.constant 15 : i32
    %19 = vector.broadcast %c15_i32 : i32 to vector<32x1xi32>
    %20 = arith.cmpi ne, %16, %19 : vector<32x1xi32>
    %c0 = arith.constant 0 : index
    %c0_4 = arith.constant 0 : index
    %21 = vector.load %arg1[%c0, %c0_4] : memref<32x64xf32, #tpu.memory_space<vmem>>, vector<32x64xf32>
    %c0_5 = arith.constant 0 : index
    %c0_6 = arith.constant 0 : index
    %22 = vector.load %arg2[%c0_5, %c0_6] : memref<32x64xf32, #tpu.memory_space<vmem>>, vector<32x64xf32>
    %cst = arith.constant 0.000000e+00 : f32
    %23 = vector.broadcast %cst : f32 to vector<32x64xf32>
    %24 = arith.maximumf %22, %23 : vector<32x64xf32>
    %c1_i32_7 = arith.constant 1 : i32
    %25 = tpu.dynamic_rotate %24 by %c1_i32_7 dim 0 : vector<32x64xf32>, i32 -> vector<32x64xf32>
    %cst_8 = arith.constant 0.000000e+00 : f32
    %26 = vector.shape_cast %18 : vector<32x1xi1> to vector<32x1xi1>
    %27 = vector.broadcast %26 : vector<32x1xi1> to vector<32x64xi1>
    %28 = vector.broadcast %cst_8 : f32 to vector<32x64xf32>
    %29 = arith.select %27, %25, %28 : vector<32x64xi1>, vector<32x64xf32>
    %c31_i32 = arith.constant 31 : i32
    %30 = tpu.dynamic_rotate %24 by %c31_i32 dim 0 : vector<32x64xf32>, i32 -> vector<32x64xf32>
    %cst_9 = arith.constant 0.000000e+00 : f32
    %31 = vector.shape_cast %20 : vector<32x1xi1> to vector<32x1xi1>
    %32 = vector.broadcast %31 : vector<32x1xi1> to vector<32x64xi1>
    %33 = vector.broadcast %cst_9 : f32 to vector<32x64xf32>
    %34 = arith.select %32, %30, %33 : vector<32x64xi1>, vector<32x64xf32>
    %35 = tpu.concatenate %29, %24, %34 in 1 : vector<32x64xf32>, vector<32x64xf32>, vector<32x64xf32> -> vector<32x192xf32>
    %c0_10 = arith.constant 0 : index
    %c0_11 = arith.constant 0 : index
    %c0_12 = arith.constant 0 : index
    %36 = vector.load %arg3[%c0_10, %c0_11, %c0_12] : memref<4x192x64xf32, #tpu.memory_space<vmem>>, vector<1x192x64xf32>
    %37 = vector.shape_cast %36 : vector<1x192x64xf32> to vector<192x64xf32>
    %cst_13 = arith.constant dense<0.000000e+00> : vector<32x64xf32>
    %38 = tpu.matmul %35, %37, %cst_13 {dimension_numbers = #tpu.dot_dimension_numbers<[1], [0], [0], [1], [0, 0, 1, 1], [], []>} : vector<32x192xf32>, vector<192x64xf32>, vector<32x64xf32> -> vector<32x64xf32>
    %c0_14 = arith.constant 0 : index
    %c0_15 = arith.constant 0 : index
    %c0_16 = arith.constant 0 : index
    %39 = vector.load %arg4[%c0_14, %c0_15, %c0_16] : memref<4x1x64xf32, #tpu.memory_space<vmem>>, vector<1x1x64xf32>
    %40 = vector.shape_cast %39 : vector<1x1x64xf32> to vector<1x64xf32>
    %41 = vector.broadcast %40 : vector<1x64xf32> to vector<32x64xf32>
    %42 = arith.addf %38, %41 : vector<32x64xf32>
    %cst_17 = arith.constant 0.000000e+00 : f32
    %43 = vector.broadcast %cst_17 : f32 to vector<32x64xf32>
    %44 = arith.maximumf %42, %43 : vector<32x64xf32>
    %c1_i32_18 = arith.constant 1 : i32
    %45 = tpu.dynamic_rotate %44 by %c1_i32_18 dim 0 : vector<32x64xf32>, i32 -> vector<32x64xf32>
    %cst_19 = arith.constant 0.000000e+00 : f32
    %46 = vector.shape_cast %18 : vector<32x1xi1> to vector<32x1xi1>
    %47 = vector.broadcast %46 : vector<32x1xi1> to vector<32x64xi1>
    %48 = vector.broadcast %cst_19 : f32 to vector<32x64xf32>
    %49 = arith.select %47, %45, %48 : vector<32x64xi1>, vector<32x64xf32>
    %c31_i32_20 = arith.constant 31 : i32
    %50 = tpu.dynamic_rotate %44 by %c31_i32_20 dim 0 : vector<32x64xf32>, i32 -> vector<32x64xf32>
    %cst_21 = arith.constant 0.000000e+00 : f32
    %51 = vector.shape_cast %20 : vector<32x1xi1> to vector<32x1xi1>
    %52 = vector.broadcast %51 : vector<32x1xi1> to vector<32x64xi1>
    %53 = vector.broadcast %cst_21 : f32 to vector<32x64xf32>
    %54 = arith.select %52, %50, %53 : vector<32x64xi1>, vector<32x64xf32>
    %55 = tpu.concatenate %49, %44, %54 in 1 : vector<32x64xf32>, vector<32x64xf32>, vector<32x64xf32> -> vector<32x192xf32>
    %c1 = arith.constant 1 : index
    %c0_22 = arith.constant 0 : index
    %c0_23 = arith.constant 0 : index
    %56 = vector.load %arg3[%c1, %c0_22, %c0_23] : memref<4x192x64xf32, #tpu.memory_space<vmem>>, vector<1x192x64xf32>
    %57 = vector.shape_cast %56 : vector<1x192x64xf32> to vector<192x64xf32>
    %cst_24 = arith.constant dense<0.000000e+00> : vector<32x64xf32>
    %58 = tpu.matmul %55, %57, %cst_24 {dimension_numbers = #tpu.dot_dimension_numbers<[1], [0], [0], [1], [0, 0, 1, 1], [], []>} : vector<32x192xf32>, vector<192x64xf32>, vector<32x64xf32> -> vector<32x64xf32>
    %c1_25 = arith.constant 1 : index
    %c0_26 = arith.constant 0 : index
    %c0_27 = arith.constant 0 : index
    %59 = vector.load %arg4[%c1_25, %c0_26, %c0_27] : memref<4x1x64xf32, #tpu.memory_space<vmem>>, vector<1x1x64xf32>
    %60 = vector.shape_cast %59 : vector<1x1x64xf32> to vector<1x64xf32>
    %61 = vector.broadcast %60 : vector<1x64xf32> to vector<32x64xf32>
    %62 = arith.addf %58, %61 : vector<32x64xf32>
    %63 = arith.addf %62, %22 : vector<32x64xf32>
    %64 = arith.addf %21, %63 : vector<32x64xf32>
    %cst_28 = arith.constant 0.000000e+00 : f32
    %65 = vector.broadcast %cst_28 : f32 to vector<32x64xf32>
    %66 = arith.maximumf %64, %65 : vector<32x64xf32>
    %c1_i32_29 = arith.constant 1 : i32
    %67 = tpu.dynamic_rotate %66 by %c1_i32_29 dim 0 : vector<32x64xf32>, i32 -> vector<32x64xf32>
    %cst_30 = arith.constant 0.000000e+00 : f32
    %68 = vector.shape_cast %18 : vector<32x1xi1> to vector<32x1xi1>
    %69 = vector.broadcast %68 : vector<32x1xi1> to vector<32x64xi1>
    %70 = vector.broadcast %cst_30 : f32 to vector<32x64xf32>
    %71 = arith.select %69, %67, %70 : vector<32x64xi1>, vector<32x64xf32>
    %c31_i32_31 = arith.constant 31 : i32
    %72 = tpu.dynamic_rotate %66 by %c31_i32_31 dim 0 : vector<32x64xf32>, i32 -> vector<32x64xf32>
    %cst_32 = arith.constant 0.000000e+00 : f32
    %73 = vector.shape_cast %20 : vector<32x1xi1> to vector<32x1xi1>
    %74 = vector.broadcast %73 : vector<32x1xi1> to vector<32x64xi1>
    %75 = vector.broadcast %cst_32 : f32 to vector<32x64xf32>
    %76 = arith.select %74, %72, %75 : vector<32x64xi1>, vector<32x64xf32>
    %77 = tpu.concatenate %71, %66, %76 in 1 : vector<32x64xf32>, vector<32x64xf32>, vector<32x64xf32> -> vector<32x192xf32>
    %c2 = arith.constant 2 : index
    %c0_33 = arith.constant 0 : index
    %c0_34 = arith.constant 0 : index
    %78 = vector.load %arg3[%c2, %c0_33, %c0_34] : memref<4x192x64xf32, #tpu.memory_space<vmem>>, vector<1x192x64xf32>
    %79 = vector.shape_cast %78 : vector<1x192x64xf32> to vector<192x64xf32>
    %cst_35 = arith.constant dense<0.000000e+00> : vector<32x64xf32>
    %80 = tpu.matmul %77, %79, %cst_35 {dimension_numbers = #tpu.dot_dimension_numbers<[1], [0], [0], [1], [0, 0, 1, 1], [], []>} : vector<32x192xf32>, vector<192x64xf32>, vector<32x64xf32> -> vector<32x64xf32>
    %c2_36 = arith.constant 2 : index
    %c0_37 = arith.constant 0 : index
    %c0_38 = arith.constant 0 : index
    %81 = vector.load %arg4[%c2_36, %c0_37, %c0_38] : memref<4x1x64xf32, #tpu.memory_space<vmem>>, vector<1x1x64xf32>
    %82 = vector.shape_cast %81 : vector<1x1x64xf32> to vector<1x64xf32>
    %83 = vector.broadcast %82 : vector<1x64xf32> to vector<32x64xf32>
    %84 = arith.addf %80, %83 : vector<32x64xf32>
    %cst_39 = arith.constant 0.000000e+00 : f32
    %85 = vector.broadcast %cst_39 : f32 to vector<32x64xf32>
    %86 = arith.maximumf %84, %85 : vector<32x64xf32>
    %c1_i32_40 = arith.constant 1 : i32
    %87 = tpu.dynamic_rotate %86 by %c1_i32_40 dim 0 : vector<32x64xf32>, i32 -> vector<32x64xf32>
    %cst_41 = arith.constant 0.000000e+00 : f32
    %88 = vector.shape_cast %18 : vector<32x1xi1> to vector<32x1xi1>
    %89 = vector.broadcast %88 : vector<32x1xi1> to vector<32x64xi1>
    %90 = vector.broadcast %cst_41 : f32 to vector<32x64xf32>
    %91 = arith.select %89, %87, %90 : vector<32x64xi1>, vector<32x64xf32>
    %c31_i32_42 = arith.constant 31 : i32
    %92 = tpu.dynamic_rotate %86 by %c31_i32_42 dim 0 : vector<32x64xf32>, i32 -> vector<32x64xf32>
    %cst_43 = arith.constant 0.000000e+00 : f32
    %93 = vector.shape_cast %20 : vector<32x1xi1> to vector<32x1xi1>
    %94 = vector.broadcast %93 : vector<32x1xi1> to vector<32x64xi1>
    %95 = vector.broadcast %cst_43 : f32 to vector<32x64xf32>
    %96 = arith.select %94, %92, %95 : vector<32x64xi1>, vector<32x64xf32>
    %97 = tpu.concatenate %91, %86, %96 in 1 : vector<32x64xf32>, vector<32x64xf32>, vector<32x64xf32> -> vector<32x192xf32>
    %c3 = arith.constant 3 : index
    %c0_44 = arith.constant 0 : index
    %c0_45 = arith.constant 0 : index
    %98 = vector.load %arg3[%c3, %c0_44, %c0_45] : memref<4x192x64xf32, #tpu.memory_space<vmem>>, vector<1x192x64xf32>
    %99 = vector.shape_cast %98 : vector<1x192x64xf32> to vector<192x64xf32>
    %cst_46 = arith.constant dense<0.000000e+00> : vector<32x64xf32>
    %100 = tpu.matmul %97, %99, %cst_46 {dimension_numbers = #tpu.dot_dimension_numbers<[1], [0], [0], [1], [0, 0, 1, 1], [], []>} : vector<32x192xf32>, vector<192x64xf32>, vector<32x64xf32> -> vector<32x64xf32>
    %c3_47 = arith.constant 3 : index
    %c0_48 = arith.constant 0 : index
    %c0_49 = arith.constant 0 : index
    %101 = vector.load %arg4[%c3_47, %c0_48, %c0_49] : memref<4x1x64xf32, #tpu.memory_space<vmem>>, vector<1x1x64xf32>
    %102 = vector.shape_cast %101 : vector<1x1x64xf32> to vector<1x64xf32>
    %103 = vector.broadcast %102 : vector<1x64xf32> to vector<32x64xf32>
    %104 = arith.addf %100, %103 : vector<32x64xf32>
    %105 = arith.addf %104, %64 : vector<32x64xf32>
    %c0_50 = arith.constant 0 : index
    %c0_51 = arith.constant 0 : index
    %106 = vector.load %arg6[%c0_50, %c0_51] : memref<64x128xf32, #tpu.memory_space<vmem>>, vector<64x128xf32>
    %cst_52 = arith.constant dense<0.000000e+00> : vector<32x128xf32>
    %107 = tpu.matmul %105, %106, %cst_52 {dimension_numbers = #tpu.dot_dimension_numbers<[1], [0], [0], [1], [0, 0, 1, 1], [], []>} : vector<32x64xf32>, vector<64x128xf32>, vector<32x128xf32> -> vector<32x128xf32>
    %c0_53 = arith.constant 0 : index
    %c0_54 = arith.constant 0 : index
    %108 = vector.load %arg5[%c0_53, %c0_54] : memref<64x32xf32, #tpu.memory_space<vmem>>, vector<64x32xf32>
    %cst_55 = arith.constant dense<0.000000e+00> : vector<64x128xf32>
    %109 = tpu.matmul %108, %107, %cst_55 {dimension_numbers = #tpu.dot_dimension_numbers<[1], [0], [0], [1], [0, 0, 1, 1], [], []>} : vector<64x32xf32>, vector<32x128xf32>, vector<64x128xf32> -> vector<64x128xf32>
    %c0_56 = arith.constant 0 : index
    %c0_57 = arith.constant 0 : index
    %110 = vector.load %arg7[%c0_56, %c0_57] : memref<1x128xf32, #tpu.memory_space<vmem>>, vector<1x128xf32>
    %111 = vector.broadcast %110 : vector<1x128xf32> to vector<64x128xf32>
    %112 = arith.addf %109, %111 : vector<64x128xf32>
    %c0_58 = arith.constant 0 : index
    %c0_59 = arith.constant 0 : index
    %113 = vector.load %arg8[%c0_58, %c0_59] : memref<64x128xf32, #tpu.memory_space<vmem>>, vector<64x128xf32>
    tpu.vector_store %arg8[%c0_58, %c0_59], %112 {strides = array<i32>} : memref<64x128xf32, #tpu.memory_space<vmem>>, vector<64x128xf32>,
    return
  }
  func.func @transform_0(%arg0: i32) -> (i32, i32) {
    %c0_i32 = arith.constant 0 : i32
    %c0_i32_0 = arith.constant 0 : i32
    return %arg0, %c0_i32 : i32, i32
  }
  func.func @transform_1(%arg0: i32) -> (i32, i32) {
    %c0_i32 = arith.constant 0 : i32
    %c0_i32_0 = arith.constant 0 : i32
    return %arg0, %c0_i32 : i32, i32
  }
  func.func @transform_2(%arg0: i32) -> (i32, i32, i32) {
    %c0_i32 = arith.constant 0 : i32
    %c0_i32_0 = arith.constant 0 : i32
    %c0_i32_1 = arith.constant 0 : i32
    %c0_i32_2 = arith.constant 0 : i32
    return %c0_i32, %c0_i32_0, %c0_i32_1 : i32, i32, i32
  }
  func.func @transform_3(%arg0: i32) -> (i32, i32, i32) {
    %c0_i32 = arith.constant 0 : i32
    %c0_i32_0 = arith.constant 0 : i32
    %c0_i32_1 = arith.constant 0 : i32
    %c0_i32_2 = arith.constant 0 : i32
    return %c0_i32, %c0_i32_0, %c0_i32_1 : i32, i32, i32
  }
  func.func @transform_4(%arg0: i32) -> (i32, i32) {
    %c0_i32 = arith.constant 0 : i32
    %c0_i32_0 = arith.constant 0 : i32
    %c0_i32_1 = arith.constant 0 : i32
    return %c0_i32, %c0_i32_0 : i32, i32
  }
  func.func @transform_5(%arg0: i32) -> (i32, i32) {
    %c0_i32 = arith.constant 0 : i32
    %c0_i32_0 = arith.constant 0 : i32
    %c0_i32_1 = arith.constant 0 : i32
    return %c0_i32, %c0_i32_0 : i32, i32
  }
  func.func @transform_6(%arg0: i32) -> (i32, i32) {
    %c0_i32 = arith.constant 0 : i32
    %c0_i32_0 = arith.constant 0 : i32
    %c0_i32_1 = arith.constant 0 : i32
    return %c0_i32, %c0_i32_0 : i32, i32
  }
  func.func @transform_7(%arg0: i32) -> (i32, i32) {
    %c0_i32 = arith.constant 0 : i32
    %c0_i32_0 = arith.constant 0 : i32
    return %arg0, %c0_i32 : i32, i32
  }
}

</mosaic_0001>

<bundles_post_ra>
// kernel: _ffb_apply.1
= control target key start
LH: loop header
LB: loop body
LE: loop exit
PB: predicated region body
PF: predicated region fallthrough
CT: control target
= control target key end

     0   :  { %v26_v0 = vlaneseq  ;;  %v1446_v4 = vmov 0.0|0.0   ;;  %s1447_s16 = smov 64   ;;  %vm157_vm1 = vcmask 523264   ;;  %vm956_vm7 = vcmask 261120   ;;  %s2168_s1 = inlined_call_operand.vmem [shape: f32[32,64], index: 1, kind: input, shape index: {}]   ;;  %s2169_s2 = inlined_call_operand.vmem [shape: f32[4,192,64], index: 2, kind: input, shape index: {}]   ;;  %s2170_s3 = inlined_call_operand.vmem [shape: f32[4,1,64], index: 3, kind: input, shape index: {}]   ;;  %s2171_s0 = inlined_call_operand.vmem [shape: f32[32,64], index: 0, kind: input, shape index: {}]   ;;  %s2172_s5 = inlined_call_operand.vmem [shape: f32[64,128], index: 5, kind: input, shape index: {}]   ;;  %s2173_s4 = inlined_call_operand.vmem [shape: f32[64,32], index: 4, kind: input, shape index: {}]   ;;  %s2174_s6 = inlined_call_operand.vmem [shape: f32[1,128], index: 6, kind: input, shape index: {}]   ;;  %s2175_s7 = inlined_call_operand.vmem [shape: f32[64,128], index: 7, kind: output, shape index: {}]  }
   0x1   :  { %v1491_v1 = vld [vmem:[%s2168_s1] sm:$0xff]  ;;  %v1496_v2 = vld [vmem:[%s2168_s1 + $0x8] sm:$0xff]  ;;  %v1501_v3 = vld [vmem:[%s2168_s1 + $0x10] sm:$0xff]  ;;  %1272 = vmatprep.subr.bf16.mxu0 %v1446_v4  ;;  %1308 = vmatprep.subr.bf16.mxu1 %v1446_v4 }
   0x2   :  { %v95_v5 = vmax.f32 %v1491_v1, 0.0  ;;  %v97_v6 = vmax.f32 %v1501_v3, 0.0  ;;  %v1510_v7 = vld [vmem:[%s2168_s1 + $0x18] sm:$0xff]  ;;  %v162_v8 = vld [vmem:[%s2169_s2] sm:$0xff]  ;;  %v163_v9 = vld [vmem:[%s2169_s2 + $0x8] sm:$0xff]  ;;  %v96_v10 = vmax.f32 %v1496_v2, 0.0 }
   0x3   :  { %v98_v11 = vmax.f32 %v1510_v7, 0.0  ;;  %v1273_v12 = vpack.c.bf16 %v163_v9, %v162_v8  ;;  %v164_v13 = vld [vmem:[%s2169_s2 + $0x10] sm:$0xff]  ;;  %v165_v14 = vld [vmem:[%s2169_s2 + $0x18] sm:$0xff]  ;;  %v1526_v15 = vshrl.u32 %v26_v0, 7  ;;  %v166_v22 = vld [vmem:[%s2169_s2 + $0x20] sm:$0xff] }
   0x4   :  { %145 = vrot.lane.b32.xlu0 %v95_v5, %s1447_s16  ;;  %v99_v16 = vrot.slane %v95_v5, 7  ;;  %149 = vrot.lane.b32.xlu1 %v97_v6, %s1447_s16  ;;  %v122_v17 = vrot.slane %v97_v6, 1  ;;  %v1276_v19 = vpack.c.bf16 %v165_v14, %v164_v13  ;;  %v120_v20 = vrot.slane %v95_v5, 1  ;;  %v167_v23 = vld [vmem:[%s2169_s2 + $0x28] sm:$0xff]  ;;  %v168_v29 = vld [vmem:[%s2169_s2 + $0x30] sm:$0xff] }
   0x5   :  { %v102_v18 = vrot.slane %v98_v11, 7  ;;  %1274 = vmatpush1.bf16.msra.mxu0 %v1273_v12  ;;  %v121_v21 = vrot.slane %v96_v10, 1  ;;  %vm124_vm0 = vcmp.lt.s32.totalorder %v1526_v15, 7  ;;  %vm103_vm2 = vcmp.lt.s32.totalorder %v1526_v15, 1  ;;  %v169_v30 = vld [vmem:[%s2169_s2 + $0x38] sm:$0xff]  ;;  %v170_v39 = vld [vmem:[%s2169_s2 + $0x40] sm:$0xff] }
   0x6   :  { %1275 = vmatprep.subr.bf16.mxu0 %v1446_v4  ;;  %v101_v26 = vrot.slane %v97_v6, 7  ;;  %v1279_v27 = vpack.c.bf16 %v167_v23, %v166_v22  ;;  %v100_v31 = vrot.slane %v96_v10, 7  ;;  %v123_v32 = vrot.slane %v98_v11, 1  ;;  %v171_v40 = vld [vmem:[%s2169_s2 + $0x48] sm:$0xff]  ;;  %v172_v42 = vld [vmem:[%s2169_s2 + $0x50] sm:$0xff]  ;;  %v173_v43 = vld [vmem:[%s2169_s2 + $0x58] sm:$0xff] }
   0x7   :  { %v127_v24 = vsel %vm124_vm0, %v120_v20, %v121_v21  ;;  %v1545_v25 = vsel %vm103_vm2, %v102_v18, %v99_v16  ;;  %v1550_v28 = vsel %vm124_vm0, %v121_v21, %v122_v17  ;;  %v1282_v35 = vpack.c.bf16 %v169_v30, %v168_v29  ;;  %v174_v45 = vld [vmem:[%s2169_s2 + $0x60] sm:$0xff]  ;;  %v175_v46 = vld [vmem:[%s2169_s2 + $0x68] sm:$0xff]  ;;  %v176_v48 = vld [vmem:[%s2169_s2 + $0x70] sm:$0xff] }
   0x8   :  { %147 = vrot.lane.b32.xlu0 %v96_v10, %s1447_s16  ;;  %151 = vrot.lane.b32.xlu1 %v98_v11, %s1447_s16  ;;  %v1561_v33 = vsel %vm103_vm2, %v99_v16, %v100_v31  ;;  %v1565_v34 = vsel %vm124_vm0, %v122_v17, %v123_v32  ;;  %v1569_v36 = vsel %vm103_vm2, %v100_v31, %v101_v26  ;;  %v177_v49 = vld [vmem:[%s2169_s2 + $0x78] sm:$0xff]  ;;  %v178_v51 = vld [vmem:[%s2169_s2 + $0x80] sm:$0xff]  ;;  %v28_v63 = vadd.s32 8, %v1526_v15 }
   0x9   :  { %1277 = vmatpush1.bf16.msra.mxu0 %v1276_v19  ;;  %1099 = vmatprep.mubr.msk.f32.mxu0 %vm157_vm1, %v127_v24  ;;  %v1573_v37 = vsel %vm124_vm0, %v123_v32, %v120_v20  ;;  %v1577_v38 = vsel %vm103_vm2, %v101_v26, %v102_v18  ;;  %v1285_v41 = vpack.c.bf16 %v171_v40, %v170_v39  ;;  %v179_v52 = vld [vmem:[%s2169_s2 + $0x88] sm:$0xff]  ;;  %v180_v54 = vld [vmem:[%s2169_s2 + $0x90] sm:$0xff]  ;;  %v181_v55 = vld [vmem:[%s2169_s2 + $0x98] sm:$0xff]  ;;  %v35_v0 = vand.u32 15, %v1526_v15 }
   0xa   :  { %1278 = vmatprep.subr.bf16.mxu0 %v1446_v4  ;;  %v1288_v44 = vpack.c.bf16 %v173_v43, %v172_v42  ;;  %v1291_v47 = vpack.c.bf16 %v175_v46, %v174_v45  ;;  %v1294_v50 = vpack.c.bf16 %v177_v49, %v176_v48  ;;  %v1297_v53 = vpack.c.bf16 %v179_v52, %v178_v51  ;;  %v182_v57 = vld [vmem:[%s2169_s2 + $0xa0] sm:$0xff]  ;;  %v183_v58 = vld [vmem:[%s2169_s2 + $0xa8] sm:$0xff]  ;;  %v184_v60 = vld [vmem:[%s2169_s2 + $0xb0] sm:$0xff] }
   0xb   :  { %v1300_v56 = vpack.c.bf16 %v181_v55, %v180_v54  ;;  %v1303_v59 = vpack.c.bf16 %v183_v58, %v182_v57  ;;  %v185_v61 = vld [vmem:[%s2169_s2 + $0xb8] sm:$0xff]  ;;  %v42_v5 = vand.u32 15, %v28_v63  ;;  %v29_v6 = vadd.s32 16, %v1526_v15  ;;  %v1104_v29 = vld [vmem:[%s2169_s2 + $0xc8] sm:$0xff]  ;;  %v1105_v30 = vld [vmem:[%s2169_s2 + $0xd0] sm:$0xff] }
   0xc   :  { %v1306_v62 = vpack.c.bf16 %v185_v61, %v184_v60  ;;  %vm1640_vm3 = vcmp.ne.s32.totalorder %v35_v0, 0  ;;  %v30_v11 = vadd.s32 24, %v1526_v15  ;;  %v1106_v32 = vld [vmem:[%s2169_s2 + $0xd8] sm:$0xff]  ;;  %v1111_v40 = vld [vmem:[%s2169_s2 + $0x100] sm:$0xff]  ;;  %v1113_v43 = vld [vmem:[%s2169_s2 + $0x110] sm:$0xff] }
   0xd   :  { %1280 = vmatpush1.bf16.msra.mxu0 %v1279_v27  ;;  %vm1644_vm4 = vcmp.ne.s32.totalorder %v42_v5, 15  ;;  %v49_v10 = vand.u32 15, %v29_v6  ;;  %v116_v12 = vsel %vm1640_vm3, %v1545_v25, 0.0  ;;  %v1115_v46 = vld [vmem:[%s2169_s2 + $0x120] sm:$0xff]  ;;  %v1117_v49 = vld [vmem:[%s2169_s2 + $0x130] sm:$0xff]  ;;  %v841_v17 = vld [vmem:[%s2172_s5 + $0x28] sm:$0xff] }
   0xe   :  { %1281 = vmatprep.subr.bf16.mxu0 %v1446_v4  ;;  %v138_v14 = vsel %vm1644_vm4, %v1550_v28, 0.0  ;;  %v56_v18 = vand.u32 15, %v30_v11  ;;  %v1103_v28 = vld [vmem:[%s2169_s2 + $0xc0] sm:$0xff]  ;;  %v1121_v55 = vld [vmem:[%s2169_s2 + $0x150] sm:$0xff] }
   0xf   :  { %vm1656_vm5 = vcmp.ne.s32.totalorder %v49_v10, 0  ;;  %v1309_v31 = vpack.c.bf16 %v1104_v29, %v1103_v28  ;;  %v1119_v52 = vld [vmem:[%s2169_s2 + $0x140] sm:$0xff]  ;;  %v1125_v61 = vld [vmem:[%s2169_s2 + $0x170] sm:$0xff] }
  0x10   :  { %v118_v21 = vsel %vm1656_vm5, %v1569_v36, 0.0  ;;  %vm1666_vm6 = vcmp.ne.s32.totalorder %v56_v18, 15  ;;  %v1123_v58 = vld [vmem:[%s2169_s2 + $0x160] sm:$0xff]  ;;  %v842_v23 = vld [vmem:[%s2172_s5 + $0x30] sm:$0xff] }
  0x11   :  { %1283 = vmatpush1.bf16.msra.mxu0 %v1282_v35  ;;  %v140_v26 = vsel %vm1666_vm6, %v1573_v37, 0.0  ;;  %1310 = vmatpush1.bf16.msra.mxu1 %v1309_v31  ;;  %v1108_v35 = vld [vmem:[%s2169_s2 + $0xe8] sm:$0xff]  ;;  %v1109_v37 = vld [vmem:[%s2169_s2 + $0xf0] sm:$0xff]  ;;  %v1098_v0 = vld [vmem:[%s2170_s3] ss:$0 sm:$0xff] }
  0x12   :  { %1284 = vmatprep.subr.bf16.mxu0 %v1446_v4  ;;  %1311 = vmatprep.subr.bf16.mxu1 %v1446_v4 }
  0x15   :  { %1286 = vmatpush1.bf16.msra.mxu0 %v1285_v41  ;;  %v1112_v41 = vld [vmem:[%s2169_s2 + $0x108] sm:$0xff] }
  0x16   :  { %1287 = vmatprep.subr.bf16.mxu0 %v1446_v4  ;;  %v1321_v42 = vpack.c.bf16 %v1112_v41, %v1111_v40 }
  0x19   :  { %1289 = vmatpush1.bf16.msra.mxu0 %v1288_v44  ;;  %v1114_v44 = vld [vmem:[%s2169_s2 + $0x118] sm:$0xff] }
  0x1a   :  { %1290 = vmatprep.subr.bf16.mxu0 %v1446_v4  ;;  %v1324_v45 = vpack.c.bf16 %v1114_v44, %v1113_v43 }
  0x1d   :  { %1292 = vmatpush1.bf16.msra.mxu0 %v1291_v47  ;;  %v1116_v47 = vld [vmem:[%s2169_s2 + $0x128] sm:$0xff] }
  0x1e   :  { %1293 = vmatprep.subr.bf16.mxu0 %v1446_v4  ;;  %v1327_v48 = vpack.c.bf16 %v1116_v47, %v1115_v46 }
  0x21   :  { %1295 = vmatpush1.bf16.msra.mxu0 %v1294_v50  ;;  %v1118_v50 = vld [vmem:[%s2169_s2 + $0x138] sm:$0xff] }
  0x22   :  { %1296 = vmatprep.subr.bf16.mxu0 %v1446_v4  ;;  %v1330_v51 = vpack.c.bf16 %v1118_v50, %v1117_v49 }
  0x25   :  { %1298 = vmatpush1.bf16.msra.mxu0 %v1297_v53  ;;  %v1120_v53 = vld [vmem:[%s2169_s2 + $0x148] sm:$0xff] }
  0x26   :  { %1299 = vmatprep.subr.bf16.mxu0 %v1446_v4  ;;  %v1333_v54 = vpack.c.bf16 %v1120_v53, %v1119_v52 }
  0x29   :  { %1301 = vmatpush1.bf16.msra.mxu0 %v1300_v56  ;;  %v1122_v56 = vld [vmem:[%s2169_s2 + $0x158] sm:$0xff] }
  0x2a   :  { %1302 = vmatprep.subr.bf16.mxu0 %v1446_v4  ;;  %v1336_v57 = vpack.c.bf16 %v1122_v56, %v1121_v55  ;;  %v1133_v55 = vld [vmem:[%s2169_s2 + $0x180] sm:$0xff]  ;;  %v1134_v56 = vld [vmem:[%s2169_s2 + $0x188] sm:$0xff] }
  0x2d   :  { %1304 = vmatpush1.bf16.msra.mxu0 %v1303_v59  ;;  %v1124_v59 = vld [vmem:[%s2169_s2 + $0x168] sm:$0xff] }
  0x2e   :  { %1305 = vmatprep.subr.bf16.mxu0 %v1446_v4  ;;  %v1339_v60 = vpack.c.bf16 %v1124_v59, %v1123_v58  ;;  %v1345_v58 = vpack.c.bf16 %v1134_v56, %v1133_v55  ;;  %v1136_v59 = vld [vmem:[%s2169_s2 + $0x198] sm:$0xff] }
  0x31   :  { %1307 = vmatpush1.bf16.msra.mxu0 %v1306_v62  ;;  %v1126_v62 = vld [vmem:[%s2169_s2 + $0x178] sm:$0xff] }
  0x32   :  { %1344 = vmatprep.subr.bf16.mxu0 %v1446_v4  ;;  %v1342_v63 = vpack.c.bf16 %v1126_v62, %v1125_v61  ;;  %v1137_v61 = vld [vmem:[%s2169_s2 + $0x1a0] sm:$0xff]  ;;  %v1138_v62 = vld [vmem:[%s2169_s2 + $0x1a8] sm:$0xff] }
  0x76   :  { %v146_v13 = vpop.permute.xlu0 %145  ;;  %v150_v19 = vpop.permute.xlu1 %149 }
  0x77   :  { %v158_v16 = vsel %vm157_vm1, %v116_v12, %v146_v13  ;;  %v160_v24 = vsel %vm157_vm1, %v118_v21, %v150_v19 }
  0x78   :  { %270 = vmatmul.mubr.f32.vlgmr.msra.gmra.mrb[0].mxu0 %v158_v16 }
  0x79   :  { %1100 = vmatprep.mubr.msk.f32.mxu0 %vm157_vm1, %v138_v14  ;;  %1346 = vmatpush1.bf16.msra.mxu0 %v1345_v58 }
  0x7a   :  { %v148_v20 = vpop.permute.xlu0 %147  ;;  %v152_v25 = vpop.permute.xlu1 %151  ;;  %1347 = vmatprep.subr.bf16.mxu0 %v1446_v4 }
  0x7b   :  { %v159_v22 = vsel %vm157_vm1, %v1561_v33, %v148_v20  ;;  %v161_v27 = vsel %vm157_vm1, %v1577_v38, %v152_v25  ;;  %v1312_v33 = vpack.c.bf16 %v1106_v32, %v1105_v30  ;;  %v1110_v38 = vld [vmem:[%s2169_s2 + $0xf8] sm:$0xff] }
  0x7c   :  { %275 = vmatmul.mubr.f32.gmra.mrb[2].mxu0 %v159_v22  ;;  %v1318_v39 = vpack.c.bf16 %v1110_v38, %v1109_v37 }
  0x7d   :  { %1101 = vmatprep.mubr.msk.f32.mxu0 %vm157_vm1, %v1565_v34  ;;  %v1107_v34 = vld [vmem:[%s2169_s2 + $0xe0] sm:$0xff]  ;;  %1313 = vmatpush1.bf16.msra.mxu1 %v1312_v33 }
  0x7e   :  { %v1315_v36 = vpack.c.bf16 %v1108_v35, %v1107_v34  ;;  %1314 = vmatprep.subr.bf16.mxu1 %v1446_v4 }
  0x80   :  { %280 = vmatmul.mubr.f32.gmra.mrb[4].mxu0 %v160_v24 }
  0x81   :  { %1102 = vmatprep.mubr.msk.f32.mxu0 %vm157_vm1, %v140_v26  ;;  %1316 = vmatpush1.bf16.msra.mxu1 %v1315_v36 }
  0x82   :  { %1317 = vmatprep.subr.bf16.mxu1 %v1446_v4 }
  0x84   :  { %285 = vmatmul.mubr.f32.gmra.mrb[6].mxu0 %v161_v27 }
  0x85   :  { %1319 = vmatpush1.bf16.msra.mxu1 %v1318_v39 }
  0x86   :  { %1320 = vmatprep.subr.bf16.mxu1 %v1446_v4 }
  0x89   :  { %1322 = vmatpush1.bf16.msra.mxu1 %v1321_v42 }
  0x8a   :  { %1323 = vmatprep.subr.bf16.mxu1 %v1446_v4 }
  0x8d   :  { %1325 = vmatpush1.bf16.msra.mxu1 %v1324_v45 }
  0x8e   :  { %1326 = vmatprep.subr.bf16.mxu1 %v1446_v4 }
  0x91   :  { %1328 = vmatpush1.bf16.msra.mxu1 %v1327_v48 }
  0x92   :  { %1329 = vmatprep.subr.bf16.mxu1 %v1446_v4 }
  0x95   :  { %1331 = vmatpush1.bf16.msra.mxu1 %v1330_v51 }
  0x96   :  { %1332 = vmatprep.subr.bf16.mxu1 %v1446_v4 }
  0x99   :  { %1334 = vmatpush1.bf16.msra.mxu1 %v1333_v54 }
  0x9a   :  { %1335 = vmatprep.subr.bf16.mxu1 %v1446_v4 }
  0x9d   :  { %1337 = vmatpush1.bf16.msra.mxu1 %v1336_v57  ;;  %v1135_v57 = vld [vmem:[%s2169_s2 + $0x190] sm:$0xff] }
  0x9e   :  { %1338 = vmatprep.subr.bf16.mxu1 %v1446_v4 }
  0xa1   :  { %1340 = vmatpush1.bf16.msra.mxu1 %v1339_v60  ;;  %v1348_v60 = vpack.c.bf16 %v1136_v59, %v1135_v57 }
  0xa2   :  { %1341 = vmatprep.subr.bf16.mxu1 %v1446_v4 }
  0xa3   :  { %1349 = vmatpush1.bf16.msra.mxu0 %v1348_v60 }
  0xa4   :  { %1350 = vmatprep.subr.bf16.mxu0 %v1446_v4 }
  0xa5   :  { %1343 = vmatpush1.bf16.msra.mxu1 %v1342_v63  ;;  %v1351_v63 = vpack.c.bf16 %v1138_v62, %v1137_v61 }
  0xa6   :  { %1380 = vmatprep.subr.bf16.mxu1 %v1446_v4 }
  0xa7   :  { %1352 = vmatpush1.bf16.msra.mxu0 %v1351_v63  ;;  %v90_v63 = vld [vmem:[%s2171_s0 + $0x18] sm:$0xff] }
  0xa8   :  { %1353 = vmatprep.subr.bf16.mxu0 %v1446_v4 }
 0x14b   :  { %v271_v5 = vpop.f32.mrb[0].mxu0 }
 0x14c   :  { %v272_v6 = vadd.f32 %v1098_v0, %v271_v5  ;;  %v273_v10 = vpop.f32.mrb[1].mxu0  ;;  %v1140_v5 = vld [vmem:[%s2169_s2 + $0x1b8] sm:$0xff] }
 0x14d   :  { %v1141_v10 = vld [vmem:[%s2169_s2 + $0x1c0] sm:$0xff] }
 0x14e   :  { %v290_v11 = vmax.f32 %v272_v6, 0.0 }
 0x14f   :  { %v276_v12 = vpop.f32.mrb[2].mxu0 }
 0x150   :  { %v277_v13 = vadd.f32 %v1098_v0, %v276_v12  ;;  %322 = vrot.lane.b32.xlu0 %v290_v11, %s1447_s16  ;;  %v278_v14 = vpop.f32.mrb[3].mxu0  ;;  %v294_v18 = vrot.slane %v290_v11, 7  ;;  %v306_v24 = vrot.slane %v290_v11, 1  ;;  %v1142_v11 = vld [vmem:[%s2169_s2 + $0x1c8] sm:$0xff] }
 0x151   :  { %v1357_v12 = vpack.c.bf16 %v1142_v11, %v1141_v10  ;;  %v1144_v14 = vld [vmem:[%s2169_s2 + $0x1d8] sm:$0xff] }
 0x152   :  { %v291_v16 = vmax.f32 %v277_v13, 0.0  ;;  %v1143_v13 = vld [vmem:[%s2169_s2 + $0x1d0] sm:$0xff] }
 0x153   :  { %v281_v19 = vpop.f32.mrb[4].mxu0 }
 0x154   :  { %v295_v20 = vrot.slane %v291_v16, 7  ;;  %v282_v21 = vadd.f32 %v1098_v0, %v281_v19  ;;  %v283_v22 = vpop.f32.mrb[5].mxu0  ;;  %324 = vrot.lane.b32.xlu1 %v291_v16, %s1447_s16  ;;  %v307_v25 = vrot.slane %v291_v16, 1  ;;  %v1360_v16 = vpack.c.bf16 %v1144_v14, %v1143_v13  ;;  %v1146_v19 = vld [vmem:[%s2169_s2 + $0x1e8] sm:$0xff] }
 0x155   :  { %v1148_v22 = vld [vmem:[%s2169_s2 + $0x1f8] sm:$0xff] }
 0x156   :  { %v292_v26 = vmax.f32 %v282_v21, 0.0  ;;  %v312_v27 = vsel %vm124_vm0, %v306_v24, %v307_v25  ;;  %v300_v28 = vsel %vm103_vm2, %v294_v18, %v295_v20  ;;  %v1147_v21 = vld [vmem:[%s2169_s2 + $0x1f0] sm:$0xff] }
 0x157   :  { %v286_v29 = vpop.f32.mrb[6].mxu0  ;;  %1129 = vmatprep.mubr.msk.f32.mxu1 %vm157_vm1, %v312_v27 }
 0x158   :  { %v296_v30 = vrot.slane %v292_v26, 7  ;;  %v308_v31 = vrot.slane %v292_v26, 1  ;;  %v287_v32 = vadd.f32 %v1098_v0, %v286_v29  ;;  %v288_v33 = vpop.f32.mrb[7].mxu0  ;;  %326 = vrot.lane.b32.xlu0 %v292_v26, %s1447_s16  ;;  %v1139_v0 = vld [vmem:[%s2169_s2 + $0x1b0] sm:$0xff]  ;;  %v1150_v26 = vld [vmem:[%s2169_s2 + $0x208] sm:$0xff]  ;;  %v1152_v29 = vld [vmem:[%s2169_s2 + $0x218] sm:$0xff] }
 0x159   :  { %v1354_v6 = vpack.c.bf16 %v1140_v5, %v1139_v0 }
 0x15a   :  { %v293_v34 = vmax.f32 %v287_v32, 0.0  ;;  %v311_v35 = vsel %vm124_vm0, %v307_v25, %v308_v31  ;;  %v299_v36 = vsel %vm103_vm2, %v295_v20, %v296_v30  ;;  %v1149_v25 = vld [vmem:[%s2169_s2 + $0x200] sm:$0xff]  ;;  %v1154_v32 = vld [vmem:[%s2169_s2 + $0x228] sm:$0xff] }
 0x15b   :  { %v315_v46 = vsel %vm1644_vm4, %v311_v35, 0.0  ;;  %v304_v50 = vsel %vm1656_vm5, %v299_v36, 0.0  ;;  %1355 = vmatpush1.bf16.msra.mxu0 %v1354_v6  ;;  %v1369_v27 = vpack.c.bf16 %v1150_v26, %v1149_v25  ;;  %v1156_v35 = vld [vmem:[%s2169_s2 + $0x238] sm:$0xff] }
 0x15c   :  { %v297_v37 = vrot.slane %v293_v34, 7  ;;  %v309_v38 = vrot.slane %v293_v34, 1  ;;  %328 = vrot.lane.b32.xlu1 %v293_v34, %s1447_s16  ;;  %1356 = vmatprep.subr.bf16.mxu0 %v1446_v4  ;;  %v1155_v34 = vld [vmem:[%s2169_s2 + $0x230] sm:$0xff] }
 0x15d   :  { %v1378_v36 = vpack.c.bf16 %v1156_v35, %v1155_v34 }
 0x15e   :  { %v301_v39 = vsel %vm103_vm2, %v297_v37, %v294_v18  ;;  %v310_v40 = vsel %vm124_vm0, %v308_v31, %v309_v38  ;;  %v313_v41 = vsel %vm124_vm0, %v309_v38, %v306_v24  ;;  %v298_v42 = vsel %vm103_vm2, %v296_v30, %v297_v37  ;;  %v1145_v18 = vld [vmem:[%s2169_s2 + $0x1e0] sm:$0xff] }
 0x15f   :  { %v302_v44 = vsel %vm1640_vm3, %v301_v39, 0.0  ;;  %v317_v52 = vsel %vm1666_vm6, %v313_v41, 0.0  ;;  %1358 = vmatpush1.bf16.msra.mxu0 %v1357_v12  ;;  %v1363_v20 = vpack.c.bf16 %v1146_v19, %v1145_v18  ;;  %v1366_v24 = vpack.c.bf16 %v1148_v22, %v1147_v21  ;;  %v1153_v31 = vld [vmem:[%s2169_s2 + $0x220] sm:$0xff] }
 0x160   :  { %1359 = vmatprep.subr.bf16.mxu0 %v1446_v4  ;;  %v1375_v33 = vpack.c.bf16 %v1154_v32, %v1153_v31  ;;  %v1128_v37 = vld [vmem:[%s2170_s3 + $0x1] ss:$0 sm:$0xff] }
 0x161   :  { %v87_v41 = vld [vmem:[%s2171_s0] sm:$0xff] }
 0x163   :  { %1361 = vmatpush1.bf16.msra.mxu0 %v1360_v16 }
 0x164   :  { %1362 = vmatprep.subr.bf16.mxu0 %v1446_v4 }
 0x167   :  { %1364 = vmatpush1.bf16.msra.mxu0 %v1363_v20 }
 0x168   :  { %1365 = vmatprep.subr.bf16.mxu0 %v1446_v4 }
 0x16b   :  { %1367 = vmatpush1.bf16.msra.mxu0 %v1366_v24 }
 0x16c   :  { %1368 = vmatprep.subr.bf16.mxu0 %v1446_v4 }
 0x16f   :  { %1370 = vmatpush1.bf16.msra.mxu0 %v1369_v27 }
 0x170   :  { %1371 = vmatprep.subr.bf16.mxu0 %v1446_v4 }
 0x1c2   :  { %v323_v43 = vpop.permute.xlu0 %322 }
 0x1c3   :  { %v334_v45 = vsel %vm157_vm1, %v302_v44, %v323_v43 }
 0x1c4   :  { %448 = vmatmul.mubr.f32.vlgmr.msra.gmra.mrb[0].mxu1 %v334_v45 }
 0x1c5   :  { %1130 = vmatprep.mubr.msk.f32.mxu1 %vm157_vm1, %v315_v46 }
 0x1c6   :  { %v325_v47 = vpop.permute.xlu1 %324 }
 0x1c7   :  { %v335_v48 = vsel %vm157_vm1, %v300_v28, %v325_v47  ;;  %v1151_v28 = vld [vmem:[%s2169_s2 + $0x210] sm:$0xff]  ;;  %v88_v47 = vld [vmem:[%s2171_s0 + $0x8] sm:$0xff] }
 0x1c8   :  { %453 = vmatmul.mubr.f32.gmra.mrb[2].mxu1 %v335_v48  ;;  %v1372_v30 = vpack.c.bf16 %v1152_v29, %v1151_v28 }
 0x1c9   :  { %1131 = vmatprep.mubr.msk.f32.mxu1 %vm157_vm1, %v310_v40 }
 0x1ca   :  { %v327_v49 = vpop.permute.xlu0 %326  ;;  %1373 = vmatpush1.bf16.msra.mxu0 %v1372_v30 }
 0x1cb   :  { %v336_v51 = vsel %vm157_vm1, %v304_v50, %v327_v49  ;;  %1374 = vmatprep.subr.bf16.mxu0 %v1446_v4 }
 0x1cc   :  { %458 = vmatmul.mubr.f32.gmra.mrb[4].mxu1 %v336_v51 }
 0x1cd   :  { %1132 = vmatprep.mubr.msk.f32.mxu1 %vm157_vm1, %v317_v52 }
 0x1ce   :  { %v329_v53 = vpop.permute.xlu1 %328  ;;  %1376 = vmatpush1.bf16.msra.mxu0 %v1375_v33 }
 0x1cf   :  { %v337_v54 = vsel %vm157_vm1, %v298_v42, %v329_v53  ;;  %1377 = vmatprep.subr.bf16.mxu0 %v1446_v4 }
 0x1d0   :  { %463 = vmatmul.mubr.f32.gmra.mrb[6].mxu1 %v337_v54 }
 0x1d2   :  { %1379 = vmatpush1.bf16.msra.mxu0 %v1378_v36  ;;  %v1163_v36 = vld [vmem:[%s2169_s2 + $0x240] sm:$0xff] }
 0x297   :  { %v449_v38 = vpop.f32.mrb[0].mxu1 }
 0x298   :  { %v450_v39 = vadd.f32 %v1128_v37, %v449_v38  ;;  %v451_v40 = vpop.f32.mrb[1].mxu1  ;;  %v1165_v38 = vld [vmem:[%s2169_s2 + $0x250] sm:$0xff] }
 0x299   :  { %v1166_v40 = vld [vmem:[%s2169_s2 + $0x258] sm:$0xff] }
 0x29a   :  { %v468_v42 = vadd.f32 %v450_v39, %v1491_v1  ;;  %v89_v1 = vld [vmem:[%s2171_s0 + $0x10] sm:$0xff] }
 0x29b   :  { %v454_v43 = vpop.f32.mrb[2].mxu1 }
 0x29c   :  { %v1892_v44 = vadd.f32 %v468_v42, %v87_v41  ;;  %v455_v45 = vadd.f32 %v1128_v37, %v454_v43  ;;  %v456_v46 = vpop.f32.mrb[3].mxu1  ;;  %v1384_v41 = vpack.c.bf16 %v1166_v40, %v1165_v38  ;;  %v1167_v42 = vld [vmem:[%s2169_s2 + $0x260] sm:$0xff]  ;;  %v1168_v43 = vld [vmem:[%s2169_s2 + $0x268] sm:$0xff] }
 0x29d   :  { %v1169_v46 = vld [vmem:[%s2169_s2 + $0x270] sm:$0xff] }
 0x29e   :  { %v469_v48 = vadd.f32 %v455_v45, %v1496_v2  ;;  %v476_v49 = vmax.f32 %v1892_v44, 0.0  ;;  %v1387_v45 = vpack.c.bf16 %v1168_v43, %v1167_v42 }
 0x29f   :  { %v459_v50 = vpop.f32.mrb[4].mxu1 }
 0x2a0   :  { %v1899_v51 = vadd.f32 %v469_v48, %v88_v47  ;;  %v460_v52 = vadd.f32 %v1128_v37, %v459_v50  ;;  %v461_v53 = vpop.f32.mrb[5].mxu1  ;;  %508 = vrot.lane.b32.xlu0 %v476_v49, %s1447_s16  ;;  %v480_v56 = vrot.slane %v476_v49, 7  ;;  %v492_v2 = vrot.slane %v476_v49, 1  ;;  %v1170_v47 = vld [vmem:[%s2169_s2 + $0x278] sm:$0xff]  ;;  %v1171_v49 = vld [vmem:[%s2169_s2 + $0x280] sm:$0xff]  ;;  %v1172_v50 = vld [vmem:[%s2169_s2 + $0x288] sm:$0xff] }
 0x2a1   :  { %v1390_v48 = vpack.c.bf16 %v1170_v47, %v1169_v46  ;;  %v1173_v53 = vld [vmem:[%s2169_s2 + $0x290] sm:$0xff] }
 0x2a2   :  { %v470_v54 = vadd.f32 %v460_v52, %v1501_v3  ;;  %v477_v55 = vmax.f32 %v1899_v51, 0.0  ;;  %v1393_v52 = vpack.c.bf16 %v1172_v50, %v1171_v49 }
 0x2a3   :  { %v464_v57 = vpop.f32.mrb[6].mxu1 }
 0x2a4   :  { %v1907_v58 = vadd.f32 %v470_v54, %v89_v1  ;;  %v465_v59 = vadd.f32 %v1128_v37, %v464_v57  ;;  %v466_v60 = vpop.f32.mrb[7].mxu1  ;;  %510 = vrot.lane.b32.xlu1 %v477_v55, %s1447_s16  ;;  %v493_v61 = vrot.slane %v477_v55, 1  ;;  %v481_v62 = vrot.slane %v477_v55, 7  ;;  %v1164_v37 = vld [vmem:[%s2169_s2 + $0x248] sm:$0xff]  ;;  %v1174_v1 = vld [vmem:[%s2169_s2 + $0x298] sm:$0xff]  ;;  %v1175_v55 = vld [vmem:[%s2169_s2 + $0x2a0] sm:$0xff] }
 0x2a5   :  { %v1381_v39 = vpack.c.bf16 %v1164_v37, %v1163_v36  ;;  %v1396_v54 = vpack.c.bf16 %v1174_v1, %v1173_v53 }
 0x2a6   :  { %v471_v0 = vadd.f32 %v465_v59, %v1510_v7  ;;  %v498_v3 = vsel %vm124_vm0, %v492_v2, %v493_v61  ;;  %v478_v5 = vmax.f32 %v1907_v58, 0.0  ;;  %v486_v6 = vsel %vm103_vm2, %v480_v56, %v481_v62  ;;  %v1178_v59 = vld [vmem:[%s2169_s2 + $0x2b8] sm:$0xff] }
 0x2a7   :  { %1159 = vmatprep.mubr.msk.f32.mxu0 %vm157_vm1, %v498_v3  ;;  %1382 = vmatpush1.bf16.msra.mxu1 %v1381_v39  ;;  %v1182_v3 = vld [vmem:[%s2169_s2 + $0x2d8] sm:$0xff] }
 0x2a8   :  { %v1920_v10 = vadd.f32 %v471_v0, %v90_v63  ;;  %v482_v11 = vrot.slane %v478_v5, 7  ;;  %v494_v12 = vrot.slane %v478_v5, 1  ;;  %512 = vrot.lane.b32.xlu0 %v478_v5, %s1447_s16  ;;  %1383 = vmatprep.subr.bf16.mxu1 %v1446_v4  ;;  %v1181_v0 = vld [vmem:[%s2169_s2 + $0x2d0] sm:$0xff] }
 0x2a9   :  { %v1408_v5 = vpack.c.bf16 %v1182_v3, %v1181_v0 }
 0x2aa   :  { %v479_v13 = vmax.f32 %v1920_v10, 0.0  ;;  %v497_v7 = vsel %vm124_vm0, %v493_v61, %v494_v12  ;;  %v485_v14 = vsel %vm103_vm2, %v481_v62, %v482_v11  ;;  %v1179_v61 = vld [vmem:[%s2169_s2 + $0x2c0] sm:$0xff]  ;;  %v1180_v62 = vld [vmem:[%s2169_s2 + $0x2c8] sm:$0xff] }
 0x2ab   :  { %v501_v27 = vsel %vm1644_vm4, %v497_v7, 0.0  ;;  %v490_v31 = vsel %vm1656_vm5, %v485_v14, 0.0  ;;  %1385 = vmatpush1.bf16.msra.mxu1 %v1384_v41  ;;  %v1405_v63 = vpack.c.bf16 %v1180_v62, %v1179_v61  ;;  %v1186_v7 = vld [vmem:[%s2169_s2 + $0x2f8] sm:$0xff] }
 0x2ac   :  { %v483_v16 = vrot.slane %v479_v13, 7  ;;  %514 = vrot.lane.b32.xlu1 %v479_v13, %s1447_s16  ;;  %v495_v18 = vrot.slane %v479_v13, 1  ;;  %1386 = vmatprep.subr.bf16.mxu1 %v1446_v4  ;;  %v1185_v13 = vld [vmem:[%s2169_s2 + $0x2f0] sm:$0xff] }
 0x2ad   :  { %v1414_v14 = vpack.c.bf16 %v1186_v7, %v1185_v13  ;;  %v1188_v13 = vld [vmem:[%s2170_s3 + $0x3] ss:$0 sm:$0xff] }
 0x2ae   :  { %v487_v19 = vsel %vm103_vm2, %v483_v16, %v480_v56  ;;  %v496_v20 = vsel %vm124_vm0, %v494_v12, %v495_v18  ;;  %v499_v21 = vsel %vm124_vm0, %v495_v18, %v492_v2  ;;  %v484_v22 = vsel %vm103_vm2, %v482_v11, %v483_v16  ;;  %v1176_v56 = vld [vmem:[%s2169_s2 + $0x2a8] sm:$0xff]  ;;  %v1177_v2 = vld [vmem:[%s2169_s2 + $0x2b0] sm:$0xff]  ;;  %v1158_v16 = vld [vmem:[%s2170_s3 + $0x2] ss:$0 sm:$0xff] }
 0x2af   :  { %v488_v25 = vsel %vm1640_vm3, %v487_v19, 0.0  ;;  %v503_v33 = vsel %vm1666_vm6, %v499_v21, 0.0  ;;  %1388 = vmatpush1.bf16.msra.mxu1 %v1387_v45  ;;  %v1399_v57 = vpack.c.bf16 %v1176_v56, %v1175_v55  ;;  %v1402_v60 = vpack.c.bf16 %v1178_v59, %v1177_v2  ;;  %v1184_v11 = vld [vmem:[%s2169_s2 + $0x2e8] sm:$0xff] }
 0x2b0   :  { %1389 = vmatprep.subr.bf16.mxu1 %v1446_v4 }
 0x2b3   :  { %1391 = vmatpush1.bf16.msra.mxu1 %v1390_v48 }
 0x2b4   :  { %1392 = vmatprep.subr.bf16.mxu1 %v1446_v4 }
 0x2b7   :  { %1394 = vmatpush1.bf16.msra.mxu1 %v1393_v52 }
 0x2b8   :  { %1395 = vmatprep.subr.bf16.mxu1 %v1446_v4 }
 0x2bb   :  { %1397 = vmatpush1.bf16.msra.mxu1 %v1396_v54 }
 0x2bc   :  { %1398 = vmatprep.subr.bf16.mxu1 %v1446_v4 }
 0x2bf   :  { %1400 = vmatpush1.bf16.msra.mxu1 %v1399_v57 }
 0x2c0   :  { %1401 = vmatprep.subr.bf16.mxu1 %v1446_v4 }
 0x2c3   :  { %1403 = vmatpush1.bf16.msra.mxu1 %v1402_v60 }
 0x2c4   :  { %1404 = vmatprep.subr.bf16.mxu1 %v1446_v4 }
 0x2c7   :  { %1406 = vmatpush1.bf16.msra.mxu1 %v1405_v63 }
 0x2c8   :  { %1407 = vmatprep.subr.bf16.mxu1 %v1446_v4 }
 0x2cb   :  { %1409 = vmatpush1.bf16.msra.mxu1 %v1408_v5  ;;  %v840_v5 = vld [vmem:[%s2172_s5 + $0x20] sm:$0xff] }
 0x2cc   :  { %1410 = vmatprep.subr.bf16.mxu1 %v1446_v4 }
 0x312   :  { %v509_v24 = vpop.permute.xlu0 %508 }
 0x313   :  { %v520_v26 = vsel %vm157_vm1, %v488_v25, %v509_v24 }
 0x314   :  { %634 = vmatmul.mubr.f32.vlgmr.msra.gmra.mrb[8].mxu0 %v520_v26  ;;  %v836_v26 = vld [vmem:[%s2172_s5] sm:$0xff] }
 0x315   :  { %1160 = vmatprep.mubr.msk.f32.mxu0 %vm157_vm1, %v501_v27  ;;  %v838_v27 = vld [vmem:[%s2172_s5 + $0x10] sm:$0xff] }
 0x316   :  { %v511_v28 = vpop.permute.xlu1 %510 }
 0x317   :  { %v521_v29 = vsel %vm157_vm1, %v486_v6, %v511_v28  ;;  %v1183_v6 = vld [vmem:[%s2169_s2 + $0x2e0] sm:$0xff] }
 0x318   :  { %639 = vmatmul.mubr.f32.gmra.mrb[10].mxu0 %v521_v29  ;;  %v1411_v12 = vpack.c.bf16 %v1184_v11, %v1183_v6  ;;  %v1424_v6 = vpack.c.bf16 %v841_v17, %v840_v5  ;;  %v843_v11 = vld [vmem:[%s2172_s5 + $0x38] sm:$0xff] }
 0x319   :  { %1161 = vmatprep.mubr.msk.f32.mxu0 %vm157_vm1, %v496_v20 }
 0x31a   :  { %v513_v30 = vpop.permute.xlu0 %512  ;;  %1412 = vmatpush1.bf16.msra.mxu1 %v1411_v12  ;;  %v1428_v12 = vpack.c.bf16 %v843_v11, %v842_v23 }
 0x31b   :  { %v522_v32 = vsel %vm157_vm1, %v490_v31, %v513_v30  ;;  %1413 = vmatprep.subr.bf16.mxu1 %v1446_v4  ;;  %v837_v4 = vld [vmem:[%s2172_s5 + $0x8] sm:$0xff]  ;;  %v839_v30 = vld [vmem:[%s2172_s5 + $0x18] sm:$0xff] }
 0x31c   :  { %644 = vmatmul.mubr.f32.gmra.mrb[12].mxu0 %v522_v32  ;;  %v1416_v29 = vpack.c.bf16 %v837_v4, %v836_v26 }
 0x31d   :  { %1162 = vmatprep.mubr.msk.f32.mxu0 %vm157_vm1, %v503_v33  ;;  %v1420_v33 = vpack.c.bf16 %v839_v30, %v838_v27 }
 0x31e   :  { %v515_v34 = vpop.permute.xlu1 %514  ;;  %1415 = vmatpush1.bf16.msra.mxu1 %v1414_v14  ;;  %1417 = vmatprep.subr.bf16.mxu0 %v1416_v29 }
 0x31f   :  { %v523_v35 = vsel %vm157_vm1, %v484_v22, %v515_v34  ;;  %1419 = vmatpush3.bf16.msra.mxu0 %v1416_v29 }
 0x320   :  { %649 = vmatmul.mubr.f32.gmra.mrb[14].mxu0 %v523_v35  ;;  %1421 = vmatprep.subr.bf16.mxu0 %v1420_v33 }
 0x323   :  { %1423 = vmatpush3.bf16.msra.mxu0 %v1420_v33 }
 0x324   :  { %1425 = vmatprep.subr.bf16.mxu0 %v1424_v6 }
 0x327   :  { %1427 = vmatpush3.bf16.msra.mxu0 %v1424_v6 }
 0x328   :  { %1429 = vmatprep.subr.bf16.mxu0 %v1428_v12 }
 0x32b   :  { %1431 = vmatpush3.bf16.msra.mxu0 %v1428_v12 }
 0x3e7   :  { %v635_v18 = vpop.f32.mrb[8].mxu0 }
 0x3e8   :  { %v636_v19 = vadd.f32 %v1158_v16, %v635_v18  ;;  %v637_v20 = vpop.f32.mrb[9].mxu0 }
 0x3ea   :  { %v654_v21 = vmax.f32 %v636_v19, 0.0 }
 0x3eb   :  { %v640_v22 = vpop.f32.mrb[10].mxu0 }
 0x3ec   :  { %v641_v24 = vadd.f32 %v1158_v16, %v640_v22  ;;  %686 = vrot.lane.b32.xlu0 %v654_v21, %s1447_s16  ;;  %v642_v25 = vpop.f32.mrb[11].mxu0  ;;  %v658_v31 = vrot.slane %v654_v21, 7  ;;  %v670_v34 = vrot.slane %v654_v21, 1 }
 0x3ee   :  { %v655_v28 = vmax.f32 %v641_v24, 0.0 }
 0x3ef   :  { %v645_v32 = vpop.f32.mrb[12].mxu0 }
 0x3f0   :  { %v659_v35 = vrot.slane %v655_v28, 7  ;;  %v671_v36 = vrot.slane %v655_v28, 1  ;;  %v646_v37 = vadd.f32 %v1158_v16, %v645_v32  ;;  %v647_v38 = vpop.f32.mrb[13].mxu0  ;;  %688 = vrot.lane.b32.xlu1 %v655_v28, %s1447_s16 }
 0x3f1   :  { %v946_v38 = vld [vmem:[%s2173_s4 + $0x28] sm:$0xff] }
 0x3f2   :  { %v656_v39 = vmax.f32 %v646_v37, 0.0  ;;  %v676_v40 = vsel %vm124_vm0, %v670_v34, %v671_v36  ;;  %v664_v41 = vsel %vm103_vm2, %v658_v31, %v659_v35  ;;  %v945_v37 = vld [vmem:[%s2173_s4 + $0x20] sm:$0xff] }
 0x3f3   :  { %v650_v42 = vpop.f32.mrb[14].mxu0  ;;  %1189 = vmatprep.mubr.msk.f32.mxu1 %vm157_vm1, %v676_v40  ;;  %v948_v40 = vld [vmem:[%s2173_s4 + $0x38] sm:$0xff] }
 0x3f4   :  { %v660_v43 = vrot.slane %v656_v39, 7  ;;  %v672_v45 = vrot.slane %v656_v39, 1  ;;  %v651_v46 = vadd.f32 %v1158_v16, %v650_v42  ;;  %v652_v47 = vpop.f32.mrb[15].mxu0  ;;  %690 = vrot.lane.b32.xlu0 %v656_v39, %s1447_s16  ;;  %v947_v39 = vld [vmem:[%s2173_s4 + $0x30] sm:$0xff] }
 0x3f6   :  { %v657_v48 = vmax.f32 %v651_v46, 0.0  ;;  %v675_v49 = vsel %vm124_vm0, %v671_v36, %v672_v45  ;;  %v663_v50 = vsel %vm103_vm2, %v659_v35, %v660_v43  ;;  %v944_v35 = vld [vmem:[%s2173_s4 + $0x18] sm:$0xff]  ;;  %v942_v36 = vld [vmem:[%s2173_s4 + $0x8] sm:$0xff] }
 0x3f7   :  { %v679_v60 = vsel %vm1644_vm4, %v675_v49, 0.0  ;;  %v668_v63 = vsel %vm1656_vm5, %v663_v50, 0.0 }
 0x3f8   :  { %v661_v52 = vrot.slane %v657_v48, 7  ;;  %v673_v53 = vrot.slane %v657_v48, 1  ;;  %692 = vrot.lane.b32.xlu1 %v657_v48, %s1447_s16 }
 0x3fa   :  { %v665_v1 = vsel %vm103_vm2, %v661_v52, %v658_v31  ;;  %v674_v54 = vsel %vm124_vm0, %v672_v45, %v673_v53  ;;  %v677_v55 = vsel %vm124_vm0, %v673_v53, %v670_v34  ;;  %v662_v56 = vsel %vm103_vm2, %v660_v43, %v661_v52 }
 0x3fb   :  { %v666_v2 = vsel %vm1640_vm3, %v665_v1, 0.0  ;;  %v681_v0 = vsel %vm1666_vm6, %v677_v55, 0.0 }
 0x45e   :  { %v687_v57 = vpop.permute.xlu0 %686 }
 0x45f   :  { %v698_v59 = vsel %vm157_vm1, %v666_v2, %v687_v57 }
 0x460   :  { %812 = vmatmul.mubr.f32.vlgmr.msra.gmra.mrb[8].mxu1 %v698_v59 }
 0x461   :  { %1190 = vmatprep.mubr.msk.f32.mxu1 %vm157_vm1, %v679_v60 }
 0x462   :  { %v689_v61 = vpop.permute.xlu1 %688 }
 0x463   :  { %v699_v62 = vsel %vm157_vm1, %v664_v41, %v689_v61  ;;  %v1197_v41 = vld [vmem:[%s2174_s6] ss:$0 sm:$0xff] }
 0x464   :  { %817 = vmatmul.mubr.f32.gmra.mrb[10].mxu1 %v699_v62 }
 0x465   :  { %1191 = vmatprep.mubr.msk.f32.mxu1 %vm157_vm1, %v674_v54 }
 0x466   :  { %v691_v15 = vpop.permute.xlu0 %690 }
 0x467   :  { %v700_v8 = vsel %vm157_vm1, %v668_v63, %v691_v15 }
 0x468   :  { %822 = vmatmul.mubr.f32.gmra.mrb[12].mxu1 %v700_v8 }
 0x469   :  { %1192 = vmatprep.mubr.msk.f32.mxu1 %vm157_vm1, %v681_v0 }
 0x46a   :  { %v693_v9 = vpop.permute.xlu1 %692 }
 0x46b   :  { %v701_v3 = vsel %vm157_vm1, %v662_v56, %v693_v9 }
 0x46c   :  { %827 = vmatmul.mubr.f32.gmra.mrb[14].mxu1 %v701_v3 }
 0x533   :  { %v813_v7 = vpop.f32.mrb[8].mxu1 }
 0x534   :  { %v814_v14 = vadd.f32 %v1188_v13, %v813_v7  ;;  %v815_v16 = vpop.f32.mrb[9].mxu1 }
 0x536   :  { %v832_v18 = vadd.f32 %v814_v14, %v1892_v44 }
 0x537   :  { %v818_v19 = vpop.f32.mrb[10].mxu1 }
 0x538   :  { %v819_v20 = vadd.f32 %v1188_v13, %v818_v19  ;;  %v820_v21 = vpop.f32.mrb[11].mxu1  ;;  %1246 = vmatprep.mubr.msk.f32.mxu0 %vm157_vm1, %v832_v18 }
 0x53a   :  { %v833_v22 = vadd.f32 %v819_v20, %v1899_v51  ;;  %v943_v51 = vld [vmem:[%s2173_s4 + $0x10] sm:$0xff] }
 0x53b   :  { %v823_v24 = vpop.f32.mrb[12].mxu1  ;;  %1263 = vmatprep.mubr.msk.f32.mxu1 %vm956_vm7, %v943_v51 }
 0x53c   :  { %v824_v25 = vadd.f32 %v1188_v13, %v823_v24  ;;  %v825_v26 = vpop.f32.mrb[13].mxu1  ;;  %1247 = vmatmul.mubr.msk.f32.vlgmr.msra.gmra.mrb[16].mxu0 %vm157_vm1, %v833_v22 }
 0x53e   :  { %v834_v4 = vadd.f32 %v824_v25, %v1907_v58  ;;  %v941_v58 = vld [vmem:[%s2173_s4] sm:$0xff] }
 0x53f   :  { %v828_v27 = vpop.f32.mrb[14].mxu1 }
 0x540   :  { %v829_v28 = vadd.f32 %v1188_v13, %v828_v27  ;;  %v830_v29 = vpop.f32.mrb[15].mxu1  ;;  %1249 = vmatprep.mubr.msk.f32.mxu0 %vm157_vm1, %v834_v4 }
 0x542   :  { %v835_v44 = vadd.f32 %v829_v28, %v1920_v10 }
 0x544   :  { %1250 = vmatmul.mubr.msk.f32.gmra.mrb[18].mxu0 %vm157_vm1, %v835_v44 }
 0x545   :  { %1260 = vmatprep.mubr.msk.f32.mxu0 %vm956_vm7, %v941_v58 }
 0x60f   :  { %v1248_v30 = vpop.f32.mrb[16].mxu0 }
 0x610   :  { %v922_v31 = vpop.f32.mrb[17].mxu0 }
 0x611   :  { %v1432_v32 = vpack.c.bf16 %v1248_v30, %v922_v31 }
 0x613   :  { %1433 = vmatprep.subr.bf16.mxu0 %v1432_v32  ;;  %1440 = vmatprep.subr.bf16.mxu1 %v1432_v32 }
 0x614   :  { %1435 = vmatpush3.bf16.msra.mxu0 %v1432_v32  ;;  %1442 = vmatpush3.bf16.msra.mxu1 %v1432_v32 }
 0x617   :  { %v1251_v10 = vpop.f32.mrb[18].mxu0 }
 0x618   :  { %v932_v33 = vpop.f32.mrb[19].mxu0 }
 0x619   :  { %v1436_v34 = vpack.c.bf16 %v1251_v10, %v932_v33 }
 0x61b   :  { %1437 = vmatprep.subr.bf16.mxu0 %v1436_v34  ;;  %1441 = vmatprep.subr.bf16.mxu1 %v1436_v34 }
 0x61c   :  { %1439 = vmatpush3.bf16.msra.mxu0 %v1436_v34  ;;  %1443 = vmatpush3.bf16.msra.mxu1 %v1436_v34 }
 0x61f   :  { %1264 = vmatmul.mubr.msk.f32.vlgmr.msra.gmra.mrb[16].mxu1 %vm956_vm7, %v944_v35  ;;  %1261 = vmatmul.mubr.msk.f32.vlgmr.msra.gmra.mrb[20].mxu0 %vm956_vm7, %v942_v36 }
 0x620   :  { %1266 = vmatprep.mubr.msk.f32.mxu1 %vm956_vm7, %v945_v37 }
 0x623   :  { %1267 = vmatmul.mubr.msk.f32.gmra.mrb[18].mxu1 %vm956_vm7, %v946_v38 }
 0x624   :  { %1269 = vmatprep.mubr.msk.f32.mxu1 %vm956_vm7, %v947_v39 }
 0x627   :  { %1270 = vmatmul.mubr.msk.f32.gmra.mrb[20].mxu1 %vm956_vm7, %v948_v40 }
 0x6f2   :  { %v1265_v42 = vpop.f32.mrb[16].mxu1  ;;  %v1262_v43 = vpop.f32.mrb[20].mxu0 }
 0x6f3   :  { %v1063_v45 = vadd.f32 %v1265_v42, %v1197_v41  ;;  %v1057_v46 = vpop.f32.mrb[17].mxu1  ;;  %v1053_v47 = vadd.f32 %v1262_v43, %v1197_v41  ;;  %v1047_v48 = vpop.f32.mrb[21].mxu0 }
 0x6f4   :  { %v1058_v49 = vadd.f32 %v1197_v41, %v1057_v46  ;;  %v1048_v50 = vadd.f32 %v1197_v41, %v1047_v48 }
 0x6f5   :  { %1089 = vst [vmem:[%s2175_s7 + $0x18] sm:$0xff] %v1063_v45  ;;  %1087 = vst [vmem:[%s2175_s7 + $0x8] sm:$0xff] %v1053_v47 }
 0x6f6   :  { %1088 = vst [vmem:[%s2175_s7 + $0x10] sm:$0xff] %v1058_v49  ;;  %v1268_v52 = vpop.f32.mrb[18].mxu1  ;;  %1086 = vst [vmem:[%s2175_s7] sm:$0xff] %v1048_v50 }
 0x6f7   :  { %v1073_v53 = vadd.f32 %v1268_v52, %v1197_v41  ;;  %v1067_v1 = vpop.f32.mrb[19].mxu1 }
 0x6f8   :  { %v1068_v54 = vadd.f32 %v1197_v41, %v1067_v1 }
 0x6f9   :  { %1091 = vst [vmem:[%s2175_s7 + $0x28] sm:$0xff] %v1073_v53 }
 0x6fa   :  { %1090 = vst [vmem:[%s2175_s7 + $0x20] sm:$0xff] %v1068_v54  ;;  %v1271_v55 = vpop.f32.mrb[20].mxu1 }
 0x6fb   :  { %v1083_v56 = vadd.f32 %v1271_v55, %v1197_v41  ;;  %v1077_v57 = vpop.f32.mrb[21].mxu1 }
 0x6fc   :  { %v1078_v2 = vadd.f32 %v1197_v41, %v1077_v57 }
 0x6fd   :  { %1093 = vst [vmem:[%s2175_s7 + $0x38] sm:$0xff] %v1083_v56 }
 0x6fe   :  { %1092 = vst [vmem:[%s2175_s7 + $0x30] sm:$0xff] %v1078_v2 }

</bundles_post_ra>
